<compile_context>
chip_gen: v7x
topology: tpu7x:2x2x1
jax: 0.10.0
libtpu: 0.0.40
codegen_flags: <defaults>
</compile_context>

<pallas_src>
import jax
import jax.numpy as jnp
from jax.experimental import pallas as pl
from jax.experimental.pallas import tpu as pltpu

_H_PI = 200                    # policy hidden width
_H_V = 100                     # value hidden width
_H_PAD = 384                   # 300 fused hidden lanes rounded up to 128-multiple
_OUT_PAD = 128                 # lane-dense output: logits in [0:a_dim], value at [a_dim]


def _relu6(x):
    return jnp.clip(x, 0.0, 6.0)


def _round_up(v, m):
    return ((v + m - 1) // m) * m


def net_kernel(x_ref, w1_ref, b1_ref, w2_ref, b2_ref, out_ref):
    """One batch tile: fused two-layer MLP for both heads.

    x_ref  : (TB, s_dim) f32
    w1_ref : (s_dim, 384) f32   b1_ref: (1, 384)
    w2_ref : (384, 128)  f32    b2_ref: (1, 128)
    out_ref: (TB, 128)   f32    (lane-dense packed logits|value|zeros)
    """
    x = x_ref[...]

    # Fused layer 1 (policy + value heads in one MXU push) + one relu6 pass.
    h = _relu6(jnp.dot(x, w1_ref[...], preferred_element_type=jnp.float32)
               + b1_ref[...])                                    # (TB, 384)

    # Fused layer 2 (block-diagonal weights) -> single lane-dense output tile.
    out = jnp.dot(h, w2_ref[...], preferred_element_type=jnp.float32) + b2_ref[...]

    # TODO(synk): this (TB, 128) f32 writeback is the dominant HBM stream while
    # only a_dim+1 lanes are useful; a sublane->lane compaction (pack 16 rows
    # into one 128-lane row) or a bf16 store would cut it 4-16x, but the
    # required in-kernel relayout is not guaranteed to lower cleanly on all
    # Mosaic versions, so it is intentionally left out of this revision.
    out_ref[...] = out.astype(out_ref.dtype)                     # (TB, 128)


def pack_params(params, a_dim):
    """Pack the 8 per-head tensors into 4 fused, lane-padded f32 tensors (once)."""
    assert a_dim + 1 <= _OUT_PAD, (
        f"packed output layout requires a_dim + 1 <= {_OUT_PAD}, got a_dim={a_dim}")

    def f32(name):
        return jnp.asarray(params[name], jnp.float32)

    s_dim = params["w_pi1"].shape[0]

    w1 = jnp.zeros((s_dim, _H_PAD), jnp.float32)
    w1 = w1.at[:, :_H_PI].set(f32("w_pi1"))
    w1 = w1.at[:, _H_PI:_H_PI + _H_V].set(f32("w_v1"))

    b1 = jnp.zeros((1, _H_PAD), jnp.float32)
    b1 = b1.at[:, :_H_PI].set(f32("b_pi1"))
    b1 = b1.at[:, _H_PI:_H_PI + _H_V].set(f32("b_v1"))

    w2 = jnp.zeros((_H_PAD, _OUT_PAD), jnp.float32)
    w2 = w2.at[:_H_PI, :a_dim].set(f32("w_pi2"))
    w2 = w2.at[_H_PI:_H_PI + _H_V, a_dim:a_dim + 1].set(f32("w_v2"))

    b2 = jnp.zeros((1, _OUT_PAD), jnp.float32)
    b2 = b2.at[:, :a_dim].set(f32("b_pi2"))
    b2 = b2.at[:, a_dim:a_dim + 1].set(f32("b_v2"))

    return w1, b1, w2, b2


def _choose_tile(B, batch_tile):
    """Pick the batch tile: big enough to amortize per-step overhead, but keep
    >=2 grid steps when possible (v7x dual-TC) and >=4 on large batches."""
    if B <= 8:
        return B                      # full-extent block (allowed for any B)
    B8 = _round_up(B, 8)
    nb_min = 2 if B8 >= 16 else 1     # give both v7x TensorCores work
    if B8 >= 4 * 1024:
        nb_min = 4                    # pipeline overlap with >=1024-row tiles
    tb = min(batch_tile, B8)
    if pl.cdiv(B8, tb) < nb_min:
        tb = _round_up(pl.cdiv(B8, nb_min), 8)
    return tb


def _net_forward_impl(x, packed, a_dim, batch_tile):
    """x: (B, s_dim) f32. Returns (logits (B, a_dim), values (B, 1))."""
    w1, b1, w2, b2 = packed
    B, s_dim = x.shape
    tb = _choose_tile(B, batch_tile)
    nb = pl.cdiv(B, tb)               # ragged last block handled by Pallas (no jnp.pad)

    weight_bytes = 4 * (w1.size + b1.size + w2.size + b2.size)
    io_bytes_per_row = 4 * (s_dim + _OUT_PAD)
    cost = pl.CostEstimate(
        flops=2 * B * (s_dim * _H_PAD + _H_PAD * _OUT_PAD),
        transcendentals=0,
        bytes_accessed=B * io_bytes_per_row + weight_bytes,
    )

    # Double-buffered x/out tiles + resident weights + the h intermediate.
    vmem_need = 2 * tb * io_bytes_per_row + weight_bytes + 4 * tb * _H_PAD
    vmem_limit = None
    if vmem_need > 14 * 1024 * 1024:  # only needed past v5e's 16 MiB scoped default
        vmem_limit = min(int(vmem_need * 3 // 2), 100 * 1024 * 1024)

    def const_spec(shape):
        # Constant index_map -> weights stay resident in VMEM across grid steps.
        return pl.BlockSpec(shape, lambda i: (0, 0))

    out = pl.pallas_call(
        net_kernel,
        out_shape=jax.ShapeDtypeStruct((B, _OUT_PAD), jnp.float32),
        grid_spec=pltpu.PrefetchScalarGridSpec(
            num_scalar_prefetch=0,
            grid=(nb,),
            in_specs=[
                pl.BlockSpec((tb, s_dim), lambda i: (i, 0)),   # x: batch-tiled
                const_spec(w1.shape),
                const_spec(b1.shape),
                const_spec(w2.shape),
                const_spec(b2.shape),
            ],
            out_specs=pl.BlockSpec((tb, _OUT_PAD), lambda i: (i, 0)),
        ),
        compiler_params=pltpu.CompilerParams(
            dimension_semantics=("parallel",),   # shards batch across v7x's 2 TCs
            vmem_limit_bytes=vmem_limit,
        ),
        cost_estimate=cost,
    )(x, w1, b1, w2, b2)

    logits = out[:, :a_dim]
    values = out[:, a_dim:a_dim + 1]
    return logits, values


def make_net_forward(params, *, batch_tile=2048):
    """Pack the parameters once (per parameter update) and return a jitted
    forward(x) -> (logits, values)."""
    a_dim = int(params["w_pi2"].shape[1])
    packed = pack_params(params, a_dim)

    @jax.jit
    def forward(x):
        return _net_forward_impl(x, packed, a_dim, batch_tile)

    return forward


def init_params(key, s_dim, a_dim):
    # Deterministic synthetic init (PyTorch set_init -> normal(0, 0.1), bias 0).
    k1, k2, k3, k4 = jax.random.split(key, 4)
    std = 0.1
    return {
        "w_pi1": (std * jax.random.normal(k1, (s_dim, 200))).astype(jnp.float32),
        "b_pi1": jnp.zeros((1, 200), jnp.float32),
        "w_pi2": (std * jax.random.normal(k2, (200, a_dim))).astype(jnp.float32),
        "b_pi2": jnp.zeros((1, a_dim), jnp.float32),
        "w_v1": (std * jax.random.normal(k3, (s_dim, 100))).astype(jnp.float32),
        "b_v1": jnp.zeros((1, 100), jnp.float32),
        "w_v2": (std * jax.random.normal(k4, (100, 1))).astype(jnp.float32),
        "b_v2": jnp.zeros((1, 1), jnp.float32),
    }


def _ref_forward(x, p):
    pi1 = jnp.clip(x @ p["w_pi1"] + p["b_pi1"], 0.0, 6.0)
    logits = pi1 @ p["w_pi2"] + p["b_pi2"]
    v1 = jnp.clip(x @ p["w_v1"] + p["b_v1"], 0.0, 6.0)
    values = v1 @ p["w_v2"] + p["b_v2"]
    return logits, values


def _check(forward, params, x, a_dim):
    logits, values = forward(x)
    jax.block_until_ready((logits, values))
    ref_logits, ref_values = _ref_forward(x, params)
    B = x.shape[0]
    assert logits.shape == (B, a_dim) and values.shape == (B, 1)
    assert jnp.allclose(logits, ref_logits, atol=1e-4, rtol=1e-4)
    assert jnp.allclose(values, ref_values, atol=1e-4, rtol=1e-4)


if __name__ == "__main__":
    key = jax.random.PRNGKey(0)
    k_p, k_x1, k_x2, k_x3 = jax.random.split(key, 4)

    s_dim, a_dim = 32, 4
    params = init_params(k_p, s_dim, a_dim)
    forward = make_net_forward(params)       # pack + jit once per param update

    # 1) B=16 -> tile 8, grid=(2,): exercises multi-step grid + resident weights.
    x1 = jax.random.normal(k_x1, (16, s_dim), dtype=jnp.float32)
    _check(forward, params, x1, a_dim)

    # 2) B=20 -> tile 8, grid=(3,) with a ragged last block (no wrapper jnp.pad).
    x2 = jax.random.normal(k_x2, (20, s_dim), dtype=jnp.float32)
    _check(forward, params, x2, a_dim)

    # 3) Tiny batch B=4 -> single full-extent block, grid=(1,).
    x3 = jax.random.normal(k_x3, (4, s_dim), dtype=jnp.float32)
    _check(forward, params, x3, a_dim)

    print("KERNEL_OK")
</pallas_src>

<mosaic_0001>
module attributes {stable_mosaic.version = 11 : i64} {
  func.func @net_kernel(%arg0: i32, %arg1: memref<8x32xf32, #tpu.memory_space<vmem>>, %arg2: memref<32x384xf32, #tpu.memory_space<vmem>>, %arg3: memref<1x384xf32, #tpu.memory_space<vmem>>, %arg4: memref<384x128xf32, #tpu.memory_space<vmem>>, %arg5: memref<1x128xf32, #tpu.memory_space<vmem>>, %arg6: memref<8x128xf32, #tpu.memory_space<vmem>>) attributes {dimension_semantics = [#tpu.dimension_semantics<parallel>], iteration_bounds = array<i64: 2>, scalar_prefetch = 0 : i64, scratch_operands = 0 : i64, tpu.core_type = #tpu.core_type<tc>, window_params = [{transform_indices = @transform_0, window_bounds = array<i64: 8, 32>}, {pipeline_mode = #tpu.pipeline_mode<synchronous>, transform_indices = @transform_1, window_bounds = array<i64: 32, 384>}, {pipeline_mode = #tpu.pipeline_mode<synchronous>, transform_indices = @transform_2, window_bounds = array<i64: 1, 384>}, {pipeline_mode = #tpu.pipeline_mode<synchronous>, transform_indices = @transform_3, window_bounds = array<i64: 384, 128>}, {pipeline_mode = #tpu.pipeline_mode<synchronous>, transform_indices = @transform_4, window_bounds = array<i64: 1, 128>}, {transform_indices = @transform_5, window_bounds = array<i64: 8, 128>}]} {
    %c0 = arith.constant 0 : index
    %c0_0 = arith.constant 0 : index
    %0 = vector.load %arg1[%c0, %c0_0] : memref<8x32xf32, #tpu.memory_space<vmem>>, vector<8x32xf32>
    %c0_1 = arith.constant 0 : index
    %c0_2 = arith.constant 0 : index
    %1 = vector.load %arg2[%c0_1, %c0_2] : memref<32x384xf32, #tpu.memory_space<vmem>>, vector<32x384xf32>
    %cst = arith.constant dense<0.000000e+00> : vector<8x384xf32>
    %2 = tpu.matmul %0, %1, %cst {dimension_numbers = #tpu.dot_dimension_numbers<[1], [0], [0], [1], [0, 0, 1, 1], [], []>} : vector<8x32xf32>, vector<32x384xf32>, vector<8x384xf32> -> vector<8x384xf32>
    %c0_3 = arith.constant 0 : index
    %c0_4 = arith.constant 0 : index
    %3 = vector.load %arg3[%c0_3, %c0_4] : memref<1x384xf32, #tpu.memory_space<vmem>>, vector<1x384xf32>
    %4 = vector.broadcast %3 : vector<1x384xf32> to vector<8x384xf32>
    %5 = arith.addf %2, %4 : vector<8x384xf32>
    %cst_5 = arith.constant 0.000000e+00 : f32
    %cst_6 = arith.constant 6.000000e+00 : f32
    %6 = vector.broadcast %cst_5 : f32 to vector<8x384xf32>
    %7 = arith.maximumf %6, %5 : vector<8x384xf32>
    %8 = vector.broadcast %cst_6 : f32 to vector<8x384xf32>
    %9 = arith.minimumf %8, %7 : vector<8x384xf32>
    %c0_7 = arith.constant 0 : index
    %c0_8 = arith.constant 0 : index
    %10 = vector.load %arg4[%c0_7, %c0_8] : memref<384x128xf32, #tpu.memory_space<vmem>>, vector<384x128xf32>
    %cst_9 = arith.constant dense<0.000000e+00> : vector<8x128xf32>
    %11 = tpu.matmul %9, %10, %cst_9 {dimension_numbers = #tpu.dot_dimension_numbers<[1], [0], [0], [1], [0, 0, 1, 1], [], []>} : vector<8x384xf32>, vector<384x128xf32>, vector<8x128xf32> -> vector<8x128xf32>
    %c0_10 = arith.constant 0 : index
    %c0_11 = arith.constant 0 : index
    %12 = vector.load %arg5[%c0_10, %c0_11] : memref<1x128xf32, #tpu.memory_space<vmem>>, vector<1x128xf32>
    %13 = vector.broadcast %12 : vector<1x128xf32> to vector<8x128xf32>
    %14 = arith.addf %11, %13 : vector<8x128xf32>
    %c0_12 = arith.constant 0 : index
    %c0_13 = arith.constant 0 : index
    %15 = vector.load %arg6[%c0_12, %c0_13] : memref<8x128xf32, #tpu.memory_space<vmem>>, vector<8x128xf32>
    tpu.vector_store %arg6[%c0_12, %c0_13], %14 {strides = array<i32>} : memref<8x128xf32, #tpu.memory_space<vmem>>, vector<8x128xf32>,
    return
  }
  func.func @transform_0(%arg0: i32) -> (i32, i32) {
    %c0_i32 = arith.constant 0 : i32
    %c0_i32_0 = arith.constant 0 : i32
    return %arg0, %c0_i32 : i32, i32
  }
  func.func @transform_1(%arg0: i32) -> (i32, i32) {
    %c0_i32 = arith.constant 0 : i32
    %c0_i32_0 = arith.constant 0 : i32
    %c0_i32_1 = arith.constant 0 : i32
    return %c0_i32, %c0_i32_0 : i32, i32
  }
  func.func @transform_2(%arg0: i32) -> (i32, i32) {
    %c0_i32 = arith.constant 0 : i32
    %c0_i32_0 = arith.constant 0 : i32
    %c0_i32_1 = arith.constant 0 : i32
    return %c0_i32, %c0_i32_0 : i32, i32
  }
  func.func @transform_3(%arg0: i32) -> (i32, i32) {
    %c0_i32 = arith.constant 0 : i32
    %c0_i32_0 = arith.constant 0 : i32
    %c0_i32_1 = arith.constant 0 : i32
    return %c0_i32, %c0_i32_0 : i32, i32
  }
  func.func @transform_4(%arg0: i32) -> (i32, i32) {
    %c0_i32 = arith.constant 0 : i32
    %c0_i32_0 = arith.constant 0 : i32
    %c0_i32_1 = arith.constant 0 : i32
    return %c0_i32, %c0_i32_0 : i32, i32
  }
  func.func @transform_5(%arg0: i32) -> (i32, i32) {
    %c0_i32 = arith.constant 0 : i32
    %c0_i32_0 = arith.constant 0 : i32
    return %arg0, %c0_i32 : i32, i32
  }
}

</mosaic_0001>

<bundles_post_ra>
// kernel: forward.1
= control target key start
LH: loop header
LB: loop body
LE: loop exit
PB: predicated region body
PF: predicated region fallthrough
CT: control target
= control target key end

     0   :  { %10 = vsyncpa [#allocation3], 0  ;;  %s1353_s0 = inlined_call_operand.hbm [shape: f32[16,32], index: 0, kind: input, shape index: {}]   ;;  %s1354_s1 = inlined_call_operand.hbm [shape: f32[32,384], index: 1, kind: input, shape index: {}]   ;;  %s1355_s2 = inlined_call_operand.vmem [shape: f32[1,384], index: 2, kind: input, shape index: {}]   ;;  %s1356_s3 = inlined_call_operand.hbm [shape: f32[384,128], index: 3, kind: input, shape index: {}]   ;;  %s1357_s4 = inlined_call_operand.vmem [shape: f32[1,128], index: 4, kind: input, shape index: {}]   ;;  %s1358_s5 = inlined_call_operand.vmem [shape: f32[16,128], index: 5, kind: output, shape index: {}]  }
   0x1   :  { %12 = vsyncpa [#allocation3 + $0x1], 0 }
   0x2   :  { %13 = vsyncpa [#allocation5], 0  ;;  %s1153_s18 = smov 0   ;;  %s1155_s19 = smov 0  }
   0x3   :  { %s1157_s20 = smov 0   ;;  %s1159_s21 = smov 0  }
   0x4 LB: > { %s1172_s22 = sadd.s32 4294967295, %s1111_s21   ;;  %p39_p0 = scmp.ne.s32.totalorder %s1103_s19, %s1099_s18  ;;  %s1111_s21 = sphi %s1159_s21, %s1373_s21   ;;  %s1107_s20 = sphi %s1157_s20, %s1372_s20   ;;  %s1103_s19 = sphi %s1155_s19, %s1371_s19   ;;  %s1099_s18 = sphi %s1153_s18, %s1370_s18  }
   0x5   : > { %p1359_p1 = scmp.eq.s32.totalorder %s1172_s22, 0  ;;  %p731_p2 = scmp.ge.s32.totalorder %s1111_s21, 1 }
   0x6   : > { %p160_p3 = scmp.lt.s32.totalorder %s1111_s21, 3  ;;  %s1113_s25 = smov [#allocation4]  }
   0x7   : > { %p1180_p4 = por %p1359_p1, %p39_p0  ;;  %s172_s26 = sshll.u32 %s1113_s25, 4  ;;  %s173_s26 = int_to_ptr.vmem [resolvable:$true] %s172_s26 }
   0x8   : > { %p1184_p5 = pnand %p731_p2, %p160_p3  ;;  %s1114_s28 = smov [#allocation6]  }
   0x9   : > { %s1362_s23 = scalar_select %p1180_p4, 1, 0 }
   0xa   : > { %s1363_s24 = scalar_select %p1184_p5, 1, 0 }
   0xb   : > { %p930_p6 = pneg %p1184_p5  ;;  %s188_s29 = sshll.u32 %s1114_s28, 4  ;;  %s1196_s29 = int_to_ptr.vmem [resolvable:$true] %s188_s29 }
   0xc   : > { %s987_s7 = scalar_lea.hbm %s1354_s1, 1536 }
   0xd   : > { %p1192_p7 = pnand %p930_p6, %p1359_p1  ;;  %p988_p8 = scmp.ne.s32.totalorder %s1354_s1, %s987_s7 }
   0xe   : > { %p994_p12 = scmp.lt.u32.totalorder %s987_s7, %s1354_s1 }
   0xf   : > { %p989_p9 = pneg %p1192_p7 }
  0x11   : > { %p990_p10 = pnand %p989_p9, %p988_p8 }
  0x13   : > { %p991_p11 = pneg %p990_p10 }
  0x15   : > { %p996_p13 = pnand %p994_p12, %p991_p11 }
  0x17   : > { %999 = shalt.err (!%p996_p13)
}
  0x18   : > { %s1000_s12 = scalar_lea.vmem %s173_s26, 1536  ;;  %p1008_p6 = scmp.lt.s32.totalorder %s173_s26, %s173_s26 }
  0x19   : > { %p1001_p0 = scmp.ne.s32.totalorder %s173_s26, %s1000_s12  ;;  %p1009_p1 = scmp.lt.s32.totalorder %s1000_s12, %s1000_s12 }
  0x1b   : > { %p1003_p2 = pnand %p1001_p0, %p989_p9  ;;  %p1010_p4 = por %p1009_p1, %p1008_p6 }
  0x1d   : > { %p1004_p3 = pneg %p1003_p2 }
  0x1f   : > { %p1011_p5 = pnand %p1010_p4, %p1004_p3 }
  0x21   : > { %1014 = shalt.err (!%p1011_p5)
}
  0x22   : > { %s1115_s13 = smov 384   ;;  %s1116_s14 = smov 24  }
  0x23   : > { %933 = dma.hbm_to_vmem [thread:$0]  (!%p1192_p7), %s1354_s1, 1536, %s173_s26, [#allocation5], %s1115_s13, %s1115_s13, %s1116_s14  }
  0x24   : > { %s1015_s25 = scalar_lea.hbm %s1356_s3, 6144 }
  0x25   : > { %p1016_p8 = scmp.ne.s32.totalorder %s1356_s3, %s1015_s25  ;;  %p1022_p5 = scmp.lt.u32.totalorder %s1015_s25, %s1356_s3 }
  0x27   : > { %p1018_p1 = pnand %p1016_p8, %p989_p9 }
  0x29   : > { %p1019_p4 = pneg %p1018_p1 }
  0x2b   : > { %p1024_p10 = pnand %p1022_p5, %p1019_p4 }
  0x2d   : > { %1027 = shalt.err (!%p1024_p10)
}
  0x2e   : > { %s1028_s26 = scalar_lea.vmem %s1196_s29, 6144  ;;  %p1036_p0 = scmp.lt.s32.totalorder %s1196_s29, %s1196_s29 }
  0x2f   : > { %p1029_p11 = scmp.ne.s32.totalorder %s1196_s29, %s1028_s26  ;;  %p1037_p2 = scmp.lt.s32.totalorder %s1028_s26, %s1028_s26 }
  0x31   : > { %p1031_p12 = pnand %p1029_p11, %p989_p9  ;;  %p1038_p3 = por %p1037_p2, %p1036_p0 }
  0x33   : > { %p1032_p13 = pneg %p1031_p12 }
  0x35   : > { %p1039_p6 = pnand %p1038_p3, %p1032_p13 }
  0x37   : > { %1042 = shalt.err (!%p1039_p6)
}
  0x38   : > { %s1117_s8 = smov 128   ;;  %s1118_s9 = smov 8  }
  0x39   : > { %936 = dma.hbm_to_vmem [thread:$0]  (!%p1192_p7), %s1356_s3, 6144, %s1196_s29, [#allocation5], %s1117_s8, %s1117_s8, %s1118_s9  }
  0x3a   : > { %s1246_s12 = sadd.s32 1, %s1111_s21   ;;  %s26_s14 = sadd.s32 1, %s1107_s20 }
  0x3b   : > { %s23_s13 = ssub.s32 %s1111_s21, %s1246_s12  ;;  %p33_p8 = scmp.ne.s32.totalorder %s1107_s20, %s1103_s19 }
  0x3c   : > { %p24_p9 = scmp.eq.s32.totalorder %s23_s13, 0  ;;  %p34_p1 = scmp.eq.s32.totalorder %s1111_s21, 0 }
  0x3d   : > { %p943_p5 = scmp.lt.s32.totalorder %s1111_s21, 2  ;;  %s205_s16 = sand.u32 1, %s1107_s20  }
  0x3e   : > { %s1255_s15 = scalar_select %p24_p9, %s1107_s20, %s26_s14  }
  0x3f   : > { %p35_p4 = por %p34_p1, %p33_p8  ;;  %s736_s17 = sshll.u32 %s1111_s21, 7 }
  0x40   : > { %s735_s18 = sshll.u32 %s205_s16, 3  ;;  %s1263_s28 = scalar_lea.hbm %s1353_s0, %s736_s17 }
  0x41   : > { %s209_s29 = scalar_lea.vmem [#allocation2], %s735_s18  ;;  %p1265_p7 = pnand %p943_p5, %p35_p4 }
  0x42   : > { %s216_s30 = sshll.u32 %s209_s29, 4  ;;  %s206_s21 = scalar_lea.sflag [#allocation3], %s205_s16  ;;  %s1269_s30 = int_to_ptr.vmem [resolvable:$true] %s216_s30 }
  0x43   : > { %s1043_s7 = scalar_lea.hbm %s1263_s28, 128  ;;  %p1045_p11 = pneg %p1265_p7 }
  0x44   : > { %p1044_p10 = scmp.ne.s32.totalorder %s1263_s28, %s1043_s7  ;;  %s1048_s9 = scalar_lea.hbm %s1353_s0, 256 }
  0x45   : > { %p1049_p0 = scmp.lt.u32.totalorder %s1263_s28, %s1353_s0  ;;  %p1050_p2 = scmp.lt.u32.totalorder %s1048_s9, %s1043_s7 }
  0x46   : > { %p1046_p12 = pnand %p1045_p11, %p1044_p10  ;;  %p1052_p6 = scmp.lt.u32.totalorder %s1043_s7, %s1263_s28 }
  0x47   : > { %p1051_p3 = por %p1050_p2, %p1049_p0 }
  0x48   : > { %p1047_p13 = pneg %p1046_p12 }
  0x49   : > { %p1053_p9 = por %p1052_p6, %p1051_p3 }
  0x4b   : > { %p1054_p8 = pnand %p1053_p9, %p1047_p13 }
  0x4d   : > { %1057 = shalt.err (!%p1054_p8)
}
  0x4e   : > { %s1058_s13 = scalar_lea.vmem %s1269_s30, 128  ;;  %s1119_s14 = smov [#allocation2]  }
  0x4f   : > { %p1059_p1 = scmp.ne.s32.totalorder %s1269_s30, %s1058_s13  ;;  %s1063_s16 = sshll.u32 %s1119_s14, 4  ;;  %s1064_s16 = int_to_ptr.vmem [resolvable:$false] %s1063_s16 }
  0x50   : > { %s1065_s17 = scalar_lea.vmem %s1064_s16, 256  ;;  %p1066_p10 = scmp.lt.s32.totalorder %s1269_s30, %s1064_s16 }
  0x51   : > { %p1061_p4 = pnand %p1059_p1, %p1045_p11  ;;  %p1067_p12 = scmp.lt.s32.totalorder %s1065_s17, %s1058_s13 }
  0x53   : > { %p1062_p5 = pneg %p1061_p4  ;;  %p1068_p0 = por %p1067_p12, %p1066_p10 }
  0x55   : > { %p1069_p2 = pnand %p1068_p0, %p1062_p5 }
  0x57   : > { %1072 = shalt.err (!%p1069_p2)
}
  0x58   : > { %940 = dma.hbm_to_vmem [thread:$0]  (!%p1265_p7), %s1263_s28, 128, %s1269_s30, %s206_s21  }
  0x59   : > { %p1366_p13 = scmp.ne.s32.totalorder %s1363_s24, 0 }
  0x5a   : > { %s227_s18 = sand.u32 (!%p1366_p13), 1, %s1103_s19   ;;  %p1367_p11 = scmp.ne.s32.totalorder (!%p1366_p13), %s1362_s23, 0 }
  0x5b   : > { %225 = sbr.rel (%p1366_p13) target bundleno = 553 (0x229), region = 40  ;;  %s1299_s27 = sshll.u32 (!%p1366_p13), %s227_s18, 3 }
  0x5c   : > { %s228_s25 = scalar_lea.sflag (!%p1366_p13), [#allocation3], %s227_s18  ;;  %s231_s29 = scalar_lea.vmem (!%p1366_p13), [#allocation2], %s1299_s27 }
  0x62   : > { %1090 = dma.done.wait (%p1367_p11), %s228_s25, 128  }
  0x63   : > { %1092 = vsyncadd (%p1367_p11), %s228_s25, 4294967168  ;;  %p1368_p3 = scmp.eq.s32.totalorder %s1172_s22, 0 }
  0x65   : > { %1094 = dma.done.wait (%p1368_p3), [#allocation5], 7680   ;;  %p1369_p7 = pmov %p1368_p3 }
  0x66   : > { %v1120_v0 = vmov 0.0|0.0   ;;  %v1121_v1 = vmov 0.0   ;;  %vm1122_vm0 = vmmov 0   ;;  %v271_v2 = vld [vmem:[#allocation4 + $0x8] sm:$0xff]  ;;  %v274_v3 = vld [vmem:[#allocation4 + $0x20] sm:$0xff]  ;;  %v273_v6 = vld [vmem:[#allocation4 + $0x18] sm:$0xff] }
  0x67   : > { %1096 = vsyncadd (%p1369_p7), [#allocation5], 4294959616  ;;  %858 = vmatprep.subr.bf16.mxu1 %v1120_v0  ;;  %367 = vmatprep.mubr.f32.mxu0 %v1121_v1  ;;  %v270_v4 = vld [vmem:[#allocation4] sm:$0xff]  ;;  %v850_v5 = vpack.c.bf16 %v274_v3, %v271_v2  ;;  %v277_v7 = vld [vmem:[#allocation4 + $0x38] sm:$0xff]  ;;  %vm299_vm1 = vcmask 261120   ;;  %p265_p6 = scmp.lt.s32.totalorder %s1172_s22, 1 }
  0x68   : > { %812 = vmatprep.mubr.msk.f32.mxu1 %vm1122_vm0, %v1121_v1  ;;  %v280_v8 = vld [vmem:[#allocation4 + $0x50] sm:$0xff]  ;;  %v852_v9 = vpack.c.bf16 %v273_v6, %v270_v4  ;;  %v279_v12 = vld [vmem:[#allocation4 + $0x48] sm:$0xff]  ;;  %v278_v15 = vld [vmem:[#allocation4 + $0x40] sm:$0xff] }
  0x69   : > { %v854_v10 = vpack.c.bf16 %v280_v8, %v277_v7  ;;  %v276_v11 = vld [vmem:[#allocation4 + $0x30] sm:$0xff]  ;;  %851 = vmatprep.subr.bf16.mxu0 %v850_v5  ;;  %v275_v14 = vld [vmem:[#allocation4 + $0x28] sm:$0xff]  ;;  %v281_v18 = vld [vmem:[#allocation4 + $0x58] sm:$0xff]  ;;  %s1375_s22 = smov (!%p265_p6, %s1172_s22), 1 }
  0x6a   : > { %v272_v13 = vld [vmem:[#allocation4 + $0x10] sm:$0xff]  ;;  %853 = vmatpush1.bf16.msra.mxu0 %v852_v9  ;;  %v856_v16 = vpack.c.bf16 %v279_v12, %v276_v11  ;;  %v466_v19 = vld [vmem:[#allocation6 + $0x80] sm:$0xff]  ;;  %v467_v20 = vld [vmem:[#allocation6 + $0x88] sm:$0xff]  ;;  %v862_v24 = vpack.c.bf16 %v281_v18, %v278_v15  ;;  %s741_s6 = sshll.u32 %s1375_s22, 3 }
  0x6b   : > { %v859_v17 = vpack.c.bf16 %v275_v14, %v272_v13  ;;  %855 = vmatprep.subr.bf16.mxu0 %v854_v10  ;;  %v864_v21 = vpack.c.bf16 %v467_v20, %v466_v19  ;;  %v450_v22 = vld [vmem:[#allocation6] sm:$0xff]  ;;  %v451_v23 = vld [vmem:[#allocation6 + $0x8] sm:$0xff]  ;;  %v468_v25 = vld [vmem:[#allocation6 + $0x90] sm:$0xff]  ;;  %s268_s26 = scalar_lea.vmem %s1358_s5, %s741_s6 }
  0x6c   : > { %v469_v26 = vld [vmem:[#allocation6 + $0x98] sm:$0xff]  ;;  %v482_v27 = vld [vmem:[#allocation6 + $0x100] sm:$0xff]  ;;  %v483_v28 = vld [vmem:[#allocation6 + $0x108] sm:$0xff]  ;;  %v866_v30 = vpack.c.bf16 %v451_v23, %v450_v22 }
  0x6d   : > { %860 = vmatpush3.bf16.msra.mxu1 %v859_v17  ;;  %v269_v29 = vld [vmem:[%s231_s29] sm:$0xff]  ;;  %v868_v31 = vpack.c.bf16 %v469_v26, %v468_v25  ;;  %v897_v34 = vpack.c.bf16 %v483_v28, %v482_v27  ;;  %v470_v35 = vld [vmem:[#allocation6 + $0xa0] sm:$0xff]  ;;  %v471_v36 = vld [vmem:[#allocation6 + $0xa8] sm:$0xff] }
  0x6e   : > { %861 = vmatprep.subr.bf16.mxu1 %v1120_v0  ;;  %857 = vmatpush1.bf16.msra.mxu0 %v856_v16  ;;  %v452_v32 = vld [vmem:[#allocation6 + $0x10] sm:$0xff]  ;;  %v453_v33 = vld [vmem:[#allocation6 + $0x18] sm:$0xff]  ;;  %v872_v40 = vpack.c.bf16 %v471_v36, %v470_v35  ;;  %v454_v41 = vld [vmem:[#allocation6 + $0x20] sm:$0xff] }
  0x6f   : > { %865 = vmatprep.subr.bf16.mxu0 %v864_v21  ;;  %v484_v37 = vld [vmem:[#allocation6 + $0x110] sm:$0xff]  ;;  %v485_v38 = vld [vmem:[#allocation6 + $0x118] sm:$0xff]  ;;  %v870_v39 = vpack.c.bf16 %v453_v33, %v452_v32  ;;  %v455_v42 = vld [vmem:[#allocation6 + $0x28] sm:$0xff] }
  0x70   : > { %v900_v43 = vpack.c.bf16 %v485_v38, %v484_v37  ;;  %v472_v44 = vld [vmem:[#allocation6 + $0xb0] sm:$0xff]  ;;  %v473_v45 = vld [vmem:[#allocation6 + $0xb8] sm:$0xff]  ;;  %v486_v46 = vld [vmem:[#allocation6 + $0x120] sm:$0xff]  ;;  %v874_v48 = vpack.c.bf16 %v455_v42, %v454_v41 }
  0x71   : > { %863 = vmatpush3.bf16.msra.mxu1 %v862_v24  ;;  %742 = vmatmul.mubr.msk.f32.vlgmr.msra.gmra.mrb[0].mxu0 %vm299_vm1, %v269_v29  ;;  %v487_v47 = vld [vmem:[#allocation6 + $0x128] sm:$0xff]  ;;  %v876_v49 = vpack.c.bf16 %v473_v45, %v472_v44  ;;  %v456_v50 = vld [vmem:[#allocation6 + $0x30] sm:$0xff]  ;;  %v457_v51 = vld [vmem:[#allocation6 + $0x38] sm:$0xff] }
  0x72   : > { %896 = vmatprep.subr.bf16.mxu1 %v1120_v0  ;;  %867 = vmatpush3.bf16.msra.mxu0 %v866_v30  ;;  %v903_v52 = vpack.c.bf16 %v487_v47, %v486_v46  ;;  %v474_v53 = vld [vmem:[#allocation6 + $0xc0] sm:$0xff]  ;;  %v475_v54 = vld [vmem:[#allocation6 + $0xc8] sm:$0xff]  ;;  %v488_v55 = vld [vmem:[#allocation6 + $0x130] sm:$0xff]  ;;  %v878_v57 = vpack.c.bf16 %v457_v51, %v456_v50  ;;  %v284_v30 = vlaneseq }
  0x73   : > { %869 = vmatprep.subr.bf16.mxu0 %v868_v31  ;;  %v489_v56 = vld [vmem:[#allocation6 + $0x138] sm:$0xff]  ;;  %v880_v58 = vpack.c.bf16 %v475_v54, %v474_v53  ;;  %v458_v59 = vld [vmem:[#allocation6 + $0x40] sm:$0xff]  ;;  %v459_v60 = vld [vmem:[#allocation6 + $0x48] sm:$0xff] }
  0x74   : > { %813 = vmatmul.mubr.msk.f32.vlgmr.msra.gmra.mrb[0].mxu1 %vm299_vm1, %v269_v29  ;;  %v906_v61 = vpack.c.bf16 %v489_v56, %v488_v55  ;;  %v476_v62 = vld [vmem:[#allocation6 + $0xd0] sm:$0xff]  ;;  %v477_v63 = vld [vmem:[#allocation6 + $0xd8] sm:$0xff]  ;;  %v491_v2 = vld [vmem:[#allocation6 + $0x148] sm:$0xff]  ;;  %v882_v3 = vpack.c.bf16 %v459_v60, %v458_v59  ;;  %v285_v31 = vshrl.u32 %v284_v30, 7 }
  0x75   : > { %898 = vmatpush3.bf16.msra.mxu1 %v897_v34  ;;  %847 = vmatprep.mubr.msk.f32.mxu1 %vm1122_vm0, %v1121_v1  ;;  %v490_v1 = vld [vmem:[#allocation6 + $0x140] sm:$0xff]  ;;  %v884_v4 = vpack.c.bf16 %v477_v63, %v476_v62  ;;  %v460_v5 = vld [vmem:[#allocation6 + $0x50] sm:$0xff]  ;;  %v461_v6 = vld [vmem:[#allocation6 + $0x58] sm:$0xff] }
  0x76   : > { %899 = vmatprep.subr.bf16.mxu1 %v1120_v0  ;;  %871 = vmatpush3.bf16.msra.mxu0 %v870_v39  ;;  %v909_v7 = vpack.c.bf16 %v491_v2, %v490_v1  ;;  %v886_v8 = vpack.c.bf16 %v461_v6, %v460_v5  ;;  %v478_v9 = vld [vmem:[#allocation6 + $0xe0] sm:$0xff]  ;;  %v479_v10 = vld [vmem:[#allocation6 + $0xe8] sm:$0xff]  ;;  %v492_v14 = vld [vmem:[#allocation6 + $0x150] sm:$0xff]  ;;  %v286_v32 = vsub.s32 0, %v285_v31  ;;  %v290_v34 = vsub.s32 1, %v285_v31 }
  0x77   : > { %873 = vmatprep.subr.bf16.mxu0 %v872_v40  ;;  %v888_v11 = vpack.c.bf16 %v479_v10, %v478_v9  ;;  %v462_v12 = vld [vmem:[#allocation6 + $0x60] sm:$0xff]  ;;  %v463_v13 = vld [vmem:[#allocation6 + $0x68] sm:$0xff]  ;;  %v493_v16 = vld [vmem:[#allocation6 + $0x158] sm:$0xff]  ;;  %v294_v35 = vsub.s32 2, %v285_v31 }
  0x78   : > { %v890_v15 = vpack.c.bf16 %v463_v13, %v462_v12  ;;  %v912_v17 = vpack.c.bf16 %v493_v16, %v492_v14  ;;  %v480_v18 = vld [vmem:[#allocation6 + $0xf0] sm:$0xff]  ;;  %v481_v19 = vld [vmem:[#allocation6 + $0xf8] sm:$0xff]  ;;  %v494_v23 = vld [vmem:[#allocation6 + $0x160] sm:$0xff] }
  0x79   : > { %901 = vmatpush3.bf16.msra.mxu1 %v900_v43  ;;  %v892_v20 = vpack.c.bf16 %v481_v19, %v480_v18  ;;  %v464_v21 = vld [vmem:[#allocation6 + $0x70] sm:$0xff]  ;;  %v465_v22 = vld [vmem:[#allocation6 + $0x78] sm:$0xff]  ;;  %v495_v25 = vld [vmem:[#allocation6 + $0x168] sm:$0xff] }
  0x7a   : > { %902 = vmatprep.subr.bf16.mxu1 %v1120_v0  ;;  %875 = vmatpush3.bf16.msra.mxu0 %v874_v48  ;;  %v894_v24 = vpack.c.bf16 %v465_v22, %v464_v21  ;;  %v915_v26 = vpack.c.bf16 %v495_v25, %v494_v23  ;;  %v496_v27 = vld [vmem:[#allocation6 + $0x170] sm:$0xff]  ;;  %v497_v28 = vld [vmem:[#allocation6 + $0x178] sm:$0xff] }
  0x7b   : > { %877 = vmatprep.subr.bf16.mxu0 %v876_v49  ;;  %v918_v29 = vpack.c.bf16 %v497_v28, %v496_v27  ;;  %v282_v33 = vld [vmem:[%s1355_s2] sm:$0x7] }
  0x7c   : > { %v287_v36 = vrot.slane %v282_v33, %v286_v32  ;;  %v291_v37 = vrot.slane %v282_v33, %v290_v34  ;;  %v295_v38 = vrot.slane %v282_v33, %v294_v35  ;;  %v744_v54 = vld [vmem:[%s1357_s4] ss:$0 sm:$0xff] }
  0x7d   : > { %904 = vmatpush3.bf16.msra.mxu1 %v903_v52 }
  0x7e   : > { %905 = vmatprep.subr.bf16.mxu1 %v1120_v0  ;;  %879 = vmatpush3.bf16.msra.mxu0 %v878_v57 }
  0x7f   : > { %881 = vmatprep.subr.bf16.mxu0 %v880_v58 }
  0x81   : > { %907 = vmatpush3.bf16.msra.mxu1 %v906_v61 }
  0x82   : > { %908 = vmatprep.subr.bf16.mxu1 %v1120_v0  ;;  %883 = vmatpush3.bf16.msra.mxu0 %v882_v3 }
  0x83   : > { %885 = vmatprep.subr.bf16.mxu0 %v884_v4 }
  0x85   : > { %910 = vmatpush3.bf16.msra.mxu1 %v909_v7 }
  0x86   : > { %911 = vmatprep.subr.bf16.mxu1 %v1120_v0  ;;  %887 = vmatpush3.bf16.msra.mxu0 %v886_v8 }
  0x87   : > { %889 = vmatprep.subr.bf16.mxu0 %v888_v11 }
  0x89   : > { %913 = vmatpush3.bf16.msra.mxu1 %v912_v17 }
  0x8a   : > { %891 = vmatpush3.bf16.msra.mxu0 %v890_v15  ;;  %914 = vmatprep.subr.bf16.mxu1 %v1120_v0 }
  0x8b   : > { %893 = vmatprep.subr.bf16.mxu0 %v892_v20 }
  0x8d   : > { %916 = vmatpush3.bf16.msra.mxu1 %v915_v26 }
  0x8e   : > { %895 = vmatpush3.bf16.msra.mxu0 %v894_v24  ;;  %917 = vmatprep.subr.bf16.mxu1 %v1120_v0 }
  0x91   : > { %919 = vmatpush3.bf16.msra.mxu1 %v918_v29 }
 0x144   : > { %v369_v39 = vpop.f32.mrb[0].mxu0 }
 0x145   : > { %v370_v40 = vadd.f32 %v369_v39, %v287_v36  ;;  %v371_v41 = vpop.f32.mrb[1].mxu0 }
 0x146   : > { %v372_v0 = vadd.f32 %v371_v41, %v291_v37 }
 0x147   : > { %v440_v42 = vpop.f32.mrb[0].mxu1  ;;  %v444_v43 = vmax.f32 %v370_v40, 0.0 }
 0x148   : > { %v441_v44 = vadd.f32 %v440_v42, %v295_v38  ;;  %v814_v45 = vpop.f32.mrb[1].mxu1  ;;  %v445_v46 = vmax.f32 %v372_v0, 0.0 }
 0x149   : > { %v447_v49 = vmin.f32 %v444_v43, 6.0 }
 0x14a   : > { %v446_v47 = vmax.f32 %v441_v44, 0.0  ;;  %v448_v48 = vmin.f32 %v445_v46, 6.0 }
 0x14c   : > { %v449_v50 = vmin.f32 %v446_v47, 6.0  ;;  %569 = vmatprep.mubr.f32.mxu0 %v448_v48 }
 0x14d   : > { %570 = vmatmul.mubr.f32.vlgmr.msra.gmra.mrb[2].mxu0 %v447_v49 }
 0x14e   : > { %848 = vmatmul.mubr.f32.vlgmr.msra.gmra.mrb[2].mxu1 %v449_v50 }
 0x220   : > { %v784_v51 = vpop.f32.mrb[2].mxu0 }
 0x221   : > { %v641_v52 = vpop.f32.mrb[2].mxu1  ;;  %v785_v53 = vpop.f32.mrb[3].mxu0 }
 0x222   : > { %v849_v55 = vpop.f32.mrb[3].mxu1  ;;  %v786_v56 = vadd.f32 %v785_v53, %v784_v51 }
 0x224   : > { %v572_v57 = vadd.f32 %v786_v56, %v744_v54 }
 0x226   : > { %v642_v58 = vadd.f32 %v641_v52, %v572_v57 }
 0x228   : > { %645 = vst [vmem:[%s268_s26] sm:$0xff] %v642_v58 }
 0x229 PF: > { %p16_p9 = scmp.ge.s32.totalorder %s1246_s12, 4   ;;  %s1370_s18 = smov %s1103_s19 }
 0x22a   : > { %s1371_s19 = smov %s1107_s20  ;;  %s1372_s20 = smov %s1255_s15 }
 0x22b   : > { %s1373_s21 = smov %s1246_s12  ;;  %18 = sbr.rel (!%p16_p9) target bundleno = 4 (0x4), region = 88 }
 0x232   :  { %665 = vsyncpa [#allocation3], 1 }
 0x233   :  { %667 = vsyncpa [#allocation3 + $0x1], 1 }
 0x234   :  { %668 = vsyncpa [#allocation5], 1 }

</bundles_post_ra>
